<compile_context>
chip_gen: v5e
topology: v5e:2x2
jax: 0.10.0
libtpu: 0.0.40
codegen_flags: <defaults>
</compile_context>

<pallas_src>
import math

import jax
import jax.numpy as jnp
from jax.experimental import pallas as pl
from jax.experimental.pallas import tpu as pltpu

BN_EPS = 1e-5


# ---------------- fused net kernel: embedding + L GraphTransformer layers ---
def _make_gt_net_kernel(num_heads: int, head_dim: int):
    H, dh = num_heads, head_dim
    D = H * dh

    def kernel(feat_ref, mask_ref, emb_w_ref, emb_b_ref,
               wqkv_ref, wo_ref, bo_ref,
               bn1s_ref, bn1t_ref, wf1_ref, bf1_ref, wf2_ref, bf2_ref,
               bn2s_ref, bn2t_ref, o_ref):
        l = pl.program_id(1)

        # layer 0: embedding_h fused in (+ in_feat_dropout = identity in eval)
        @pl.when(l == 0)
        def _():
            o_ref[...] = (jnp.dot(feat_ref[...].astype(jnp.bfloat16), emb_w_ref[...],
                                  preferred_element_type=jnp.float32)
                          + emb_b_ref[...])

        h = o_ref[...]                               # (BN, D) f32, resident across l
        hb = h.astype(jnp.bfloat16)
        mask = mask_ref[0]                           # (BN, BN) f32 block-diag in-edge mask

        # fused lane-dense QKV projection; 1/sqrt(dh) pre-folded into the Q block
        qkv = jnp.dot(hb, wqkv_ref[0], preferred_element_type=jnp.float32)   # (BN, 3D)
        q, k, v = qkv[:, :D], qkv[:, D:2 * D], qkv[:, 2 * D:]

        # per-head masked attention, all 2D matmuls (statically unrolled over heads)
        attn_cols = []
        for hh in range(H):
            sl = slice(hh * dh, (hh + 1) * dh)
            s = jax.lax.dot_general(                 # (BN, BN) = Q_h @ K_h^T (pre-scaled)
                q[:, sl].astype(jnp.bfloat16), k[:, sl].astype(jnp.bfloat16),
                (((1,), (1,)), ((), ())),
                preferred_element_type=jnp.float32)
            s = jnp.exp(jnp.clip(s, -5.0, 5.0)) * mask
            z = jnp.sum(s, axis=-1, keepdims=True)   # (BN, 1) denominator (XLU row-sum)
            wv = jnp.dot(s.astype(jnp.bfloat16), v[:, sl].astype(jnp.bfloat16),
                         preferred_element_type=jnp.float32)               # (BN, dh)
            attn_cols.append(wv / (z + 1e-6))
        attn = jnp.concatenate(attn_cols, axis=-1).astype(jnp.bfloat16)     # (BN, D)

        # head merge -> lane-dense O projection, residual, folded BatchNorm1d
        ho = jnp.dot(attn, wo_ref[0], preferred_element_type=jnp.float32) + bo_ref[0]
        h1 = h + ho
        h1 = h1 * bn1s_ref[0] + bn1t_ref[0]

        # FFN, residual, folded BatchNorm1d
        ff = jnp.dot(h1.astype(jnp.bfloat16), wf1_ref[0],
                     preferred_element_type=jnp.float32) + bf1_ref[0]
        ff = jnp.maximum(ff, 0.0)
        ff = jnp.dot(ff.astype(jnp.bfloat16), wf2_ref[0],
                     preferred_element_type=jnp.float32) + bf2_ref[0]
        h2 = h1 + ff
        h2 = h2 * bn2s_ref[0] + bn2t_ref[0]

        o_ref[...] = h2                              # stays resident until g changes

    return kernel


def gt_net_fused(h_feat_flat, mask, params, num_heads, Bblk, N):
    M, in_dim = h_feat_flat.shape
    BN = Bblk * N
    G = M // BN
    D = params["w_o"].shape[-1]
    L = params["w_qkv"].shape[0]
    Dff = params["w_ff1"].shape[2]
    dh = D // num_heads

    full2 = lambda r, c: pl.BlockSpec((r, c), lambda g, l: (0, 0))
    layer3 = lambda r, c: pl.BlockSpec((1, r, c), lambda g, l: (l, 0, 0))

    return pl.pallas_call(
        _make_gt_net_kernel(num_heads, dh),
        out_shape=jax.ShapeDtypeStruct((M, D), jnp.float32),
        grid=(G, L),
        in_specs=[
            pl.BlockSpec((BN, in_dim), lambda g, l: (g, 0)),     # raw node features
            pl.BlockSpec((1, BN, BN), lambda g, l: (g, 0, 0)),   # block-diag in-edge mask
            full2(in_dim, D), full2(1, D),                       # embedding_h
            layer3(D, 3 * D),                                    # fused Wqkv (scale folded)
            layer3(D, D), layer3(1, D),                          # Wo, b_o
            layer3(1, D), layer3(1, D),                          # BN1 scale/shift
            layer3(D, Dff), layer3(1, Dff),                      # FFN1
            layer3(Dff, D), layer3(1, D),                        # FFN2
            layer3(1, D), layer3(1, D),                          # BN2 scale/shift
        ],
        out_specs=pl.BlockSpec((BN, D), lambda g, l: (g, 0)),    # revisited across l
        compiler_params=pltpu.CompilerParams(
            dimension_semantics=("parallel", "arbitrary"),
            vmem_limit_bytes=32 * 1024 * 1024),
    )(h_feat_flat, mask,
      params["emb_w"], params["emb_b"],
      params["w_qkv"], params["w_o"], params["b_o"],
      params["bn1_scale"], params["bn1_shift"],
      params["w_ff1"], params["b_ff1"], params["w_ff2"], params["b_ff2"],
      params["bn2_scale"], params["bn2_shift"])


# -------------------- fused MLPReadout head ----------------------------------
def _mlp_readout_kernel(x_ref, w1_ref, b1_ref, w2_ref, b2_ref, w3_ref, b3_ref, o_ref):
    y = jnp.dot(x_ref[...].astype(jnp.bfloat16), w1_ref[...],
                preferred_element_type=jnp.float32) + b1_ref[...]
    y = jnp.maximum(y, 0.0)
    y = jnp.dot(y.astype(jnp.bfloat16), w2_ref[...],
                preferred_element_type=jnp.float32) + b2_ref[...]
    y = jnp.maximum(y, 0.0)
    y = jnp.dot(y.astype(jnp.bfloat16), w3_ref[...],
                preferred_element_type=jnp.float32) + b3_ref[...]
    o_ref[...] = y


def readout_mlp(hg, mlp):
    B, D = hg.shape
    (w1, b1), (w2, b2), (w3, b3) = mlp
    d1, d2, nc = w1.shape[1], w2.shape[1], w3.shape[1]
    f = lambda r, c: pl.BlockSpec((r, c), lambda i: (0, 0))
    return pl.pallas_call(
        _mlp_readout_kernel,
        out_shape=jax.ShapeDtypeStruct((B, nc), jnp.float32),
        grid=(1,),
        in_specs=[f(B, D), f(D, d1), f(1, d1), f(d1, d2), f(1, d2), f(d2, nc), f(1, nc)],
        out_specs=f(B, nc),
    )(hg, w1, b1, w2, b2, w3, b3)


# -------------------- host-side (plain JAX) glue ------------------------------
def _pick_bblk(B, N, target_bn=256):
    """Largest divisor of B with Bblk*N <= target_bn (and 8-aligned rows);
    back off one step if that would leave a single grid block (megacore)."""
    divs = [d for d in range(1, B + 1) if B % d == 0]
    ok = [d for d in divs if d * N <= target_bn and (d * N) % 8 == 0]
    if not ok:
        return B                      # single full block: exempt from (8,128) rule
    best = max(ok)
    if best == B and B > 1:
        smaller = [d for d in ok if d < B]
        if smaller:
            best = max(smaller)       # keep G >= 2 so "parallel" axis can shard cores
    return best


def _block_diag_mask(adj_in, Bblk):
    # adj_in[b, dst, src] -> (B//Bblk, Bblk*N, Bblk*N) block-diagonal f32 masks
    B, N, _ = adj_in.shape
    G = B // Bblk
    a = adj_in.reshape(G, Bblk, N, N)
    eye = jnp.eye(Bblk, dtype=adj_in.dtype)
    m = a[:, :, None, :, :] * eye[None, :, :, None, None]       # (G,Bblk,Bblk,N,N)
    return jnp.transpose(m, (0, 1, 3, 2, 4)).reshape(G, Bblk * N, Bblk * N)


# -------------------- parameter init (deterministic, PyTorch-style) ----------
def _init_linear(key, fan_in, fan_out, bias=True):
    kw, kb = jax.random.split(key)
    bound = 1.0 / math.sqrt(fan_in)
    w = jax.random.uniform(kw, (fan_in, fan_out), jnp.float32, -bound, bound)
    if not bias:
        return w, None
    b = jax.random.uniform(kb, (fan_out,), jnp.float32, -bound, bound)
    return w, b


def _bn_fold(dim):
    gamma = jnp.ones((dim,), jnp.float32)
    beta = jnp.zeros((dim,), jnp.float32)
    running_mean = jnp.zeros((dim,), jnp.float32)
    running_var = jnp.ones((dim,), jnp.float32)
    scale = gamma / jnp.sqrt(running_var + BN_EPS)
    shift = beta - running_mean * scale
    return scale.reshape(1, dim), shift.reshape(1, dim)


def init_params(key, in_dim, hidden_dim, out_dim, n_heads, n_layers, n_classes):
    # layer stacking assumes the standard TU config where hidden_dim == out_dim
    assert hidden_dim == out_dim, "fused layer stack assumes hidden_dim == out_dim"
    D = hidden_dim
    dh = D // n_heads
    inv_sqrt_dh = 1.0 / math.sqrt(dh)
    keys = jax.random.split(key, 1 + 6 * n_layers + 3)
    it = iter(keys)
    bf16 = jnp.bfloat16
    p = {"n_heads": n_heads}

    w, b = _init_linear(next(it), in_dim, D)
    p["emb_w"] = w.astype(bf16)
    p["emb_b"] = b.reshape(1, D)

    wqkv_l, wo_l, bo_l = [], [], []
    bn1s_l, bn1t_l, bn2s_l, bn2t_l = [], [], [], []
    wf1_l, bf1_l, wf2_l, bf2_l = [], [], [], []
    for _ in range(n_layers):
        wq, _ = _init_linear(next(it), D, D, bias=False)
        wk, _ = _init_linear(next(it), D, D, bias=False)
        wv, _ = _init_linear(next(it), D, D, bias=False)
        wo, bo = _init_linear(next(it), D, D)
        wf1, bf1 = _init_linear(next(it), D, 2 * D)
        wf2, bf2 = _init_linear(next(it), 2 * D, D)
        bn1s, bn1t = _bn_fold(D)
        bn2s, bn2t = _bn_fold(D)
        # 1/sqrt(dh) folded into the Q block of the fused QKV weight
        wqkv_l.append(jnp.concatenate([wq * inv_sqrt_dh, wk, wv], axis=1))
        wo_l.append(wo)
        bo_l.append(bo.reshape(1, D))
        bn1s_l.append(bn1s); bn1t_l.append(bn1t)
        wf1_l.append(wf1); bf1_l.append(bf1.reshape(1, 2 * D))
        wf2_l.append(wf2); bf2_l.append(bf2.reshape(1, D))
        bn2s_l.append(bn2s); bn2t_l.append(bn2t)

    p["w_qkv"] = jnp.stack(wqkv_l).astype(bf16)          # (L, D, 3D)
    p["w_o"] = jnp.stack(wo_l).astype(bf16)              # (L, D, D)
    p["b_o"] = jnp.stack(bo_l)                           # (L, 1, D)
    p["bn1_scale"] = jnp.stack(bn1s_l); p["bn1_shift"] = jnp.stack(bn1t_l)
    p["w_ff1"] = jnp.stack(wf1_l).astype(bf16); p["b_ff1"] = jnp.stack(bf1_l)
    p["w_ff2"] = jnp.stack(wf2_l).astype(bf16); p["b_ff2"] = jnp.stack(bf2_l)
    p["bn2_scale"] = jnp.stack(bn2s_l); p["bn2_shift"] = jnp.stack(bn2t_l)

    # MLPReadout: out_dim -> out_dim//2 -> out_dim//4 -> n_classes
    mdims = [out_dim, out_dim // 2, out_dim // 4, n_classes]
    mlp = []
    for i in range(3):
        w, b = _init_linear(next(it), mdims[i], mdims[i + 1])
        mlp.append((w.astype(bf16), b.reshape(1, mdims[i + 1])))
    p["mlp"] = mlp
    return p


# -------------------- full forward pass ---------------------------------------
def graph_transformer_net_forward(params, h_feat, adj):
    B, N, in_dim = h_feat.shape
    H = params["n_heads"]
    D = params["w_o"].shape[-1]
    # TODO(synk): lap_pos_enc / wl_pos_enc branches skipped (flags False in this
    # config); wl_pos_enc would need an embedding-table gather.

    Bblk = _pick_bblk(B, N)
    adj_in = jnp.transpose(adj, (0, 2, 1))               # [b, dst, src]
    mask = _block_diag_mask(adj_in, Bblk)                # (G, Bblk*N, Bblk*N) f32

    # one fused kernel: embedding_h + all L GraphTransformer layers
    h = gt_net_fused(h_feat.reshape(B * N, in_dim), mask, params, H, Bblk, N)

    # dgl.mean_nodes: cheap (B, D) pooling in plain XLA (no O(B^2*N) matrix)
    hg = h.reshape(B, N, D).mean(axis=1)
    return readout_mlp(hg, params["mlp"])                # (B, n_classes)


if __name__ == "__main__":
    key = jax.random.PRNGKey(0)
    k_param, k_feat, k_adj = jax.random.split(key, 3)

    B, N = 2, 16
    in_dim, hidden_dim, out_dim = 16, 32, 32
    n_heads, n_layers, n_classes = 4, 2, 2

    params = init_params(k_param, in_dim, hidden_dim, out_dim,
                         n_heads, n_layers, n_classes)

    h_feat = jax.random.normal(k_feat, (B, N, in_dim), jnp.float32)
    adj = (jax.random.uniform(k_adj, (B, N, N)) < 0.3).astype(jnp.float32)
    adj = jnp.maximum(adj, jnp.transpose(adj, (0, 2, 1)))          # undirected
    adj = jnp.maximum(adj, jnp.eye(N, dtype=jnp.float32)[None])    # self-loops

    scores = graph_transformer_net_forward(params, h_feat, adj)
    scores = jax.block_until_ready(scores)

    assert scores.shape == (B, n_classes), scores.shape
    assert bool(jnp.all(jnp.isfinite(scores)))
    print("KERNEL_OK")
</pallas_src>

<mosaic_0001>
module attributes {stable_mosaic.version = 11 : i64} {
  func.func @kernel(%arg0: i32, %arg1: i32, %arg2: memref<16x16xf32, #tpu.memory_space<vmem>>, %arg3: memref<1x16x16xf32, #tpu.memory_space<vmem>>, %arg4: memref<16x32xbf16, #tpu.memory_space<vmem>>, %arg5: memref<1x32xf32, #tpu.memory_space<vmem>>, %arg6: memref<1x32x96xbf16, #tpu.memory_space<vmem>>, %arg7: memref<1x32x32xbf16, #tpu.memory_space<vmem>>, %arg8: memref<1x1x32xf32, #tpu.memory_space<vmem>>, %arg9: memref<1x1x32xf32, #tpu.memory_space<vmem>>, %arg10: memref<1x1x32xf32, #tpu.memory_space<vmem>>, %arg11: memref<1x32x64xbf16, #tpu.memory_space<vmem>>, %arg12: memref<1x1x64xf32, #tpu.memory_space<vmem>>, %arg13: memref<1x64x32xbf16, #tpu.memory_space<vmem>>, %arg14: memref<1x1x32xf32, #tpu.memory_space<vmem>>, %arg15: memref<1x1x32xf32, #tpu.memory_space<vmem>>, %arg16: memref<1x1x32xf32, #tpu.memory_space<vmem>>, %arg17: memref<16x32xf32, #tpu.memory_space<vmem>>) attributes {dimension_semantics = [#tpu.dimension_semantics<parallel>, #tpu.dimension_semantics<arbitrary>], iteration_bounds = array<i64: 2, 2>, scalar_prefetch = 0 : i64, scratch_operands = 0 : i64, tpu.core_type = #tpu.core_type<tc>, window_params = [{transform_indices = @transform_0, window_bounds = array<i64: 16, 16>}, {transform_indices = @transform_1, window_bounds = array<i64: 1, 16, 16>}, {pipeline_mode = #tpu.pipeline_mode<synchronous>, transform_indices = @transform_2, window_bounds = array<i64: 16, 32>}, {pipeline_mode = #tpu.pipeline_mode<synchronous>, transform_indices = @transform_3, window_bounds = array<i64: 1, 32>}, {transform_indices = @transform_4, window_bounds = array<i64: 1, 32, 96>}, {transform_indices = @transform_5, window_bounds = array<i64: 1, 32, 32>}, {transform_indices = @transform_6, window_bounds = array<i64: 1, 1, 32>}, {transform_indices = @transform_7, window_bounds = array<i64: 1, 1, 32>}, {transform_indices = @transform_8, window_bounds = array<i64: 1, 1, 32>}, {transform_indices = @transform_9, window_bounds = array<i64: 1, 32, 64>}, {transform_indices = @transform_10, window_bounds = array<i64: 1, 1, 64>}, {transform_indices = @transform_11, window_bounds = array<i64: 1, 64, 32>}, {transform_indices = @transform_12, window_bounds = array<i64: 1, 1, 32>}, {transform_indices = @transform_13, window_bounds = array<i64: 1, 1, 32>}, {transform_indices = @transform_14, window_bounds = array<i64: 1, 1, 32>}, {transform_indices = @transform_15, window_bounds = array<i64: 16, 32>}]} {
    %c0_i32 = arith.constant 0 : i32
    %0 = arith.cmpi eq, %arg1, %c0_i32 : i32
    %1 = arith.extui %0 : i1 to i32
    %c0_i32_0 = arith.constant 0 : i32
    %2 = arith.cmpi ne, %1, %c0_i32_0 : i32
    scf.if %2 {
      %c0_68 = arith.constant 0 : index
      %c0_69 = arith.constant 0 : index
      %143 = vector.load %arg2[%c0_68, %c0_69] : memref<16x16xf32, #tpu.memory_space<vmem>>, vector<16x16xf32>
      %144 = arith.truncf %143 : vector<16x16xf32> to vector<16x16xbf16>
      %c0_70 = arith.constant 0 : index
      %c0_71 = arith.constant 0 : index
      %145 = vector.load %arg4[%c0_70, %c0_71] : memref<16x32xbf16, #tpu.memory_space<vmem>>, vector<16x32xbf16>
      %cst_72 = arith.constant dense<0.000000e+00> : vector<16x32xf32>
      %146 = tpu.matmul %144, %145, %cst_72 {dimension_numbers = #tpu.dot_dimension_numbers<[1], [0], [0], [1], [0, 0, 1, 1], [], []>} : vector<16x16xbf16>, vector<16x32xbf16>, vector<16x32xf32> -> vector<16x32xf32>
      %c0_73 = arith.constant 0 : index
      %c0_74 = arith.constant 0 : index
      %147 = vector.load %arg5[%c0_73, %c0_74] : memref<1x32xf32, #tpu.memory_space<vmem>>, vector<1x32xf32>
      %148 = vector.broadcast %147 : vector<1x32xf32> to vector<16x32xf32>
      %149 = arith.addf %146, %148 : vector<16x32xf32>
      %c0_75 = arith.constant 0 : index
      %c0_76 = arith.constant 0 : index
      %150 = vector.load %arg17[%c0_75, %c0_76] : memref<16x32xf32, #tpu.memory_space<vmem>>, vector<16x32xf32>
      tpu.vector_store %arg17[%c0_75, %c0_76], %149 {strides = array<i32>} : memref<16x32xf32, #tpu.memory_space<vmem>>, vector<16x32xf32>,
    } else {
    }
    %c0 = arith.constant 0 : index
    %c0_1 = arith.constant 0 : index
    %3 = vector.load %arg17[%c0, %c0_1] : memref<16x32xf32, #tpu.memory_space<vmem>>, vector<16x32xf32>
    %4 = arith.truncf %3 : vector<16x32xf32> to vector<16x32xbf16>
    %c0_2 = arith.constant 0 : index
    %c0_3 = arith.constant 0 : index
    %c0_4 = arith.constant 0 : index
    %5 = vector.load %arg3[%c0_2, %c0_3, %c0_4] : memref<1x16x16xf32, #tpu.memory_space<vmem>>, vector<1x16x16xf32>
    %6 = vector.shape_cast %5 : vector<1x16x16xf32> to vector<16x16xf32>
    %c0_5 = arith.constant 0 : index
    %c0_6 = arith.constant 0 : index
    %c0_7 = arith.constant 0 : index
    %7 = vector.load %arg6[%c0_5, %c0_6, %c0_7] : memref<1x32x96xbf16, #tpu.memory_space<vmem>>, vector<1x32x96xbf16>
    %8 = vector.shape_cast %7 : vector<1x32x96xbf16> to vector<32x96xbf16>
    %cst = arith.constant dense<0.000000e+00> : vector<16x96xf32>
    %9 = tpu.matmul %4, %8, %cst {dimension_numbers = #tpu.dot_dimension_numbers<[1], [0], [0], [1], [0, 0, 1, 1], [], []>} : vector<16x32xbf16>, vector<32x96xbf16>, vector<16x96xf32> -> vector<16x96xf32>
    %10 = vector.extract_strided_slice %9 {offsets = [0, 0], sizes = [16, 32], strides = [1, 1]} : vector<16x96xf32> to vector<16x32xf32>
    %11 = vector.extract_strided_slice %9 {offsets = [0, 32], sizes = [16, 32], strides = [1, 1]} : vector<16x96xf32> to vector<16x32xf32>
    %12 = vector.extract_strided_slice %9 {offsets = [0, 64], sizes = [16, 32], strides = [1, 1]} : vector<16x96xf32> to vector<16x32xf32>
    %13 = vector.extract_strided_slice %10 {offsets = [0, 0], sizes = [16, 8], strides = [1, 1]} : vector<16x32xf32> to vector<16x8xf32>
    %14 = arith.truncf %13 : vector<16x8xf32> to vector<16x8xbf16>
    %15 = vector.extract_strided_slice %11 {offsets = [0, 0], sizes = [16, 8], strides = [1, 1]} : vector<16x32xf32> to vector<16x8xf32>
    %16 = arith.truncf %15 : vector<16x8xf32> to vector<16x8xbf16>
    %cst_8 = arith.constant dense<0.000000e+00> : vector<16x16xf32>
    %17 = tpu.matmul %14, %16, %cst_8 {dimension_numbers = #tpu.dot_dimension_numbers<[1], [1], [0], [0], [0, 0, 1, 0], [], []>} : vector<16x8xbf16>, vector<16x8xbf16>, vector<16x16xf32> -> vector<16x16xf32>
    %cst_9 = arith.constant -5.000000e+00 : f32
    %cst_10 = arith.constant 5.000000e+00 : f32
    %18 = vector.broadcast %cst_9 : f32 to vector<16x16xf32>
    %19 = arith.maximumf %18, %17 : vector<16x16xf32>
    %20 = vector.broadcast %cst_10 : f32 to vector<16x16xf32>
    %21 = arith.minimumf %20, %19 : vector<16x16xf32>
    %22 = math.exp %21 : vector<16x16xf32>
    %23 = arith.mulf %22, %6 : vector<16x16xf32>
    %cst_11 = arith.constant dense<0.000000e+00> : vector<16xf32>
    %24 = vector.multi_reduction <add>, %23, %cst_11 [1] : vector<16x16xf32> to vector<16xf32>
    %25 = vector.shape_cast %24 : vector<16xf32> to vector<16x1xf32>
    %26 = arith.truncf %23 : vector<16x16xf32> to vector<16x16xbf16>
    %27 = vector.extract_strided_slice %12 {offsets = [0, 0], sizes = [16, 8], strides = [1, 1]} : vector<16x32xf32> to vector<16x8xf32>
    %28 = arith.truncf %27 : vector<16x8xf32> to vector<16x8xbf16>
    %cst_12 = arith.constant dense<0.000000e+00> : vector<16x8xf32>
    %29 = tpu.matmul %26, %28, %cst_12 {dimension_numbers = #tpu.dot_dimension_numbers<[1], [0], [0], [1], [0, 0, 1, 1], [], []>} : vector<16x16xbf16>, vector<16x8xbf16>, vector<16x8xf32> -> vector<16x8xf32>
    %cst_13 = arith.constant 9.99999997E-7 : f32
    %30 = vector.broadcast %cst_13 : f32 to vector<16x1xf32>
    %31 = arith.addf %25, %30 : vector<16x1xf32>
    %32 = vector.broadcast %31 : vector<16x1xf32> to vector<16x8xf32>
    %33 = arith.divf %29, %32 : vector<16x8xf32>
    %34 = vector.extract_strided_slice %10 {offsets = [0, 8], sizes = [16, 8], strides = [1, 1]} : vector<16x32xf32> to vector<16x8xf32>
    %35 = arith.truncf %34 : vector<16x8xf32> to vector<16x8xbf16>
    %36 = vector.extract_strided_slice %11 {offsets = [0, 8], sizes = [16, 8], strides = [1, 1]} : vector<16x32xf32> to vector<16x8xf32>
    %37 = arith.truncf %36 : vector<16x8xf32> to vector<16x8xbf16>
    %cst_14 = arith.constant dense<0.000000e+00> : vector<16x16xf32>
    %38 = tpu.matmul %35, %37, %cst_14 {dimension_numbers = #tpu.dot_dimension_numbers<[1], [1], [0], [0], [0, 0, 1, 0], [], []>} : vector<16x8xbf16>, vector<16x8xbf16>, vector<16x16xf32> -> vector<16x16xf32>
    %cst_15 = arith.constant -5.000000e+00 : f32
    %cst_16 = arith.constant 5.000000e+00 : f32
    %39 = vector.broadcast %cst_15 : f32 to vector<16x16xf32>
    %40 = arith.maximumf %39, %38 : vector<16x16xf32>
    %41 = vector.broadcast %cst_16 : f32 to vector<16x16xf32>
    %42 = arith.minimumf %41, %40 : vector<16x16xf32>
    %43 = math.exp %42 : vector<16x16xf32>
    %44 = arith.mulf %43, %6 : vector<16x16xf32>
    %cst_17 = arith.constant dense<0.000000e+00> : vector<16xf32>
    %45 = vector.multi_reduction <add>, %44, %cst_17 [1] : vector<16x16xf32> to vector<16xf32>
    %46 = vector.shape_cast %45 : vector<16xf32> to vector<16x1xf32>
    %47 = arith.truncf %44 : vector<16x16xf32> to vector<16x16xbf16>
    %48 = vector.extract_strided_slice %12 {offsets = [0, 8], sizes = [16, 8], strides = [1, 1]} : vector<16x32xf32> to vector<16x8xf32>
    %49 = arith.truncf %48 : vector<16x8xf32> to vector<16x8xbf16>
    %cst_18 = arith.constant dense<0.000000e+00> : vector<16x8xf32>
    %50 = tpu.matmul %47, %49, %cst_18 {dimension_numbers = #tpu.dot_dimension_numbers<[1], [0], [0], [1], [0, 0, 1, 1], [], []>} : vector<16x16xbf16>, vector<16x8xbf16>, vector<16x8xf32> -> vector<16x8xf32>
    %cst_19 = arith.constant 9.99999997E-7 : f32
    %51 = vector.broadcast %cst_19 : f32 to vector<16x1xf32>
    %52 = arith.addf %46, %51 : vector<16x1xf32>
    %53 = vector.broadcast %52 : vector<16x1xf32> to vector<16x8xf32>
    %54 = arith.divf %50, %53 : vector<16x8xf32>
    %55 = vector.extract_strided_slice %10 {offsets = [0, 16], sizes = [16, 8], strides = [1, 1]} : vector<16x32xf32> to vector<16x8xf32>
    %56 = arith.truncf %55 : vector<16x8xf32> to vector<16x8xbf16>
    %57 = vector.extract_strided_slice %11 {offsets = [0, 16], sizes = [16, 8], strides = [1, 1]} : vector<16x32xf32> to vector<16x8xf32>
    %58 = arith.truncf %57 : vector<16x8xf32> to vector<16x8xbf16>
    %cst_20 = arith.constant dense<0.000000e+00> : vector<16x16xf32>
    %59 = tpu.matmul %56, %58, %cst_20 {dimension_numbers = #tpu.dot_dimension_numbers<[1], [1], [0], [0], [0, 0, 1, 0], [], []>} : vector<16x8xbf16>, vector<16x8xbf16>, vector<16x16xf32> -> vector<16x16xf32>
    %cst_21 = arith.constant -5.000000e+00 : f32
    %cst_22 = arith.constant 5.000000e+00 : f32
    %60 = vector.broadcast %cst_21 : f32 to vector<16x16xf32>
    %61 = arith.maximumf %60, %59 : vector<16x16xf32>
    %62 = vector.broadcast %cst_22 : f32 to vector<16x16xf32>
    %63 = arith.minimumf %62, %61 : vector<16x16xf32>
    %64 = math.exp %63 : vector<16x16xf32>
    %65 = arith.mulf %64, %6 : vector<16x16xf32>
    %cst_23 = arith.constant dense<0.000000e+00> : vector<16xf32>
    %66 = vector.multi_reduction <add>, %65, %cst_23 [1] : vector<16x16xf32> to vector<16xf32>
    %67 = vector.shape_cast %66 : vector<16xf32> to vector<16x1xf32>
    %68 = arith.truncf %65 : vector<16x16xf32> to vector<16x16xbf16>
    %69 = vector.extract_strided_slice %12 {offsets = [0, 16], sizes = [16, 8], strides = [1, 1]} : vector<16x32xf32> to vector<16x8xf32>
    %70 = arith.truncf %69 : vector<16x8xf32> to vector<16x8xbf16>
    %cst_24 = arith.constant dense<0.000000e+00> : vector<16x8xf32>
    %71 = tpu.matmul %68, %70, %cst_24 {dimension_numbers = #tpu.dot_dimension_numbers<[1], [0], [0], [1], [0, 0, 1, 1], [], []>} : vector<16x16xbf16>, vector<16x8xbf16>, vector<16x8xf32> -> vector<16x8xf32>
    %cst_25 = arith.constant 9.99999997E-7 : f32
    %72 = vector.broadcast %cst_25 : f32 to vector<16x1xf32>
    %73 = arith.addf %67, %72 : vector<16x1xf32>
    %74 = vector.broadcast %73 : vector<16x1xf32> to vector<16x8xf32>
    %75 = arith.divf %71, %74 : vector<16x8xf32>
    %76 = vector.extract_strided_slice %10 {offsets = [0, 24], sizes = [16, 8], strides = [1, 1]} : vector<16x32xf32> to vector<16x8xf32>
    %77 = arith.truncf %76 : vector<16x8xf32> to vector<16x8xbf16>
    %78 = vector.extract_strided_slice %11 {offsets = [0, 24], sizes = [16, 8], strides = [1, 1]} : vector<16x32xf32> to vector<16x8xf32>
    %79 = arith.truncf %78 : vector<16x8xf32> to vector<16x8xbf16>
    %cst_26 = arith.constant dense<0.000000e+00> : vector<16x16xf32>
    %80 = tpu.matmul %77, %79, %cst_26 {dimension_numbers = #tpu.dot_dimension_numbers<[1], [1], [0], [0], [0, 0, 1, 0], [], []>} : vector<16x8xbf16>, vector<16x8xbf16>, vector<16x16xf32> -> vector<16x16xf32>
    %cst_27 = arith.constant -5.000000e+00 : f32
    %cst_28 = arith.constant 5.000000e+00 : f32
    %81 = vector.broadcast %cst_27 : f32 to vector<16x16xf32>
    %82 = arith.maximumf %81, %80 : vector<16x16xf32>
    %83 = vector.broadcast %cst_28 : f32 to vector<16x16xf32>
    %84 = arith.minimumf %83, %82 : vector<16x16xf32>
    %85 = math.exp %84 : vector<16x16xf32>
    %86 = arith.mulf %85, %6 : vector<16x16xf32>
    %cst_29 = arith.constant dense<0.000000e+00> : vector<16xf32>
    %87 = vector.multi_reduction <add>, %86, %cst_29 [1] : vector<16x16xf32> to vector<16xf32>
    %88 = vector.shape_cast %87 : vector<16xf32> to vector<16x1xf32>
    %89 = arith.truncf %86 : vector<16x16xf32> to vector<16x16xbf16>
    %90 = vector.extract_strided_slice %12 {offsets = [0, 24], sizes = [16, 8], strides = [1, 1]} : vector<16x32xf32> to vector<16x8xf32>
    %91 = arith.truncf %90 : vector<16x8xf32> to vector<16x8xbf16>
    %cst_30 = arith.constant dense<0.000000e+00> : vector<16x8xf32>
    %92 = tpu.matmul %89, %91, %cst_30 {dimension_numbers = #tpu.dot_dimension_numbers<[1], [0], [0], [1], [0, 0, 1, 1], [], []>} : vector<16x16xbf16>, vector<16x8xbf16>, vector<16x8xf32> -> vector<16x8xf32>
    %cst_31 = arith.constant 9.99999997E-7 : f32
    %93 = vector.broadcast %cst_31 : f32 to vector<16x1xf32>
    %94 = arith.addf %88, %93 : vector<16x1xf32>
    %95 = vector.broadcast %94 : vector<16x1xf32> to vector<16x8xf32>
    %96 = arith.divf %92, %95 : vector<16x8xf32>
    %97 = tpu.concatenate %33, %54, %75, %96 in 1 : vector<16x8xf32>, vector<16x8xf32>, vector<16x8xf32>, vector<16x8xf32> -> vector<16x32xf32>
    %98 = arith.truncf %97 : vector<16x32xf32> to vector<16x32xbf16>
    %c0_32 = arith.constant 0 : index
    %c0_33 = arith.constant 0 : index
    %c0_34 = arith.constant 0 : index
    %99 = vector.load %arg7[%c0_32, %c0_33, %c0_34] : memref<1x32x32xbf16, #tpu.memory_space<vmem>>, vector<1x32x32xbf16>
    %100 = vector.shape_cast %99 : vector<1x32x32xbf16> to vector<32x32xbf16>
    %cst_35 = arith.constant dense<0.000000e+00> : vector<16x32xf32>
    %101 = tpu.matmul %98, %100, %cst_35 {dimension_numbers = #tpu.dot_dimension_numbers<[1], [0], [0], [1], [0, 0, 1, 1], [], []>} : vector<16x32xbf16>, vector<32x32xbf16>, vector<16x32xf32> -> vector<16x32xf32>
    %c0_36 = arith.constant 0 : index
    %c0_37 = arith.constant 0 : index
    %c0_38 = arith.constant 0 : index
    %102 = vector.load %arg8[%c0_36, %c0_37, %c0_38] : memref<1x1x32xf32, #tpu.memory_space<vmem>>, vector<1x1x32xf32>
    %103 = vector.shape_cast %102 : vector<1x1x32xf32> to vector<1x32xf32>
    %104 = vector.broadcast %103 : vector<1x32xf32> to vector<16x32xf32>
    %105 = arith.addf %101, %104 : vector<16x32xf32>
    %106 = arith.addf %3, %105 : vector<16x32xf32>
    %c0_39 = arith.constant 0 : index
    %c0_40 = arith.constant 0 : index
    %c0_41 = arith.constant 0 : index
    %107 = vector.load %arg9[%c0_39, %c0_40, %c0_41] : memref<1x1x32xf32, #tpu.memory_space<vmem>>, vector<1x1x32xf32>
    %108 = vector.shape_cast %107 : vector<1x1x32xf32> to vector<1x32xf32>
    %109 = vector.broadcast %108 : vector<1x32xf32> to vector<16x32xf32>
    %110 = arith.mulf %106, %109 : vector<16x32xf32>
    %c0_42 = arith.constant 0 : index
    %c0_43 = arith.constant 0 : index
    %c0_44 = arith.constant 0 : index
    %111 = vector.load %arg10[%c0_42, %c0_43, %c0_44] : memref<1x1x32xf32, #tpu.memory_space<vmem>>, vector<1x1x32xf32>
    %112 = vector.shape_cast %111 : vector<1x1x32xf32> to vector<1x32xf32>
    %113 = vector.broadcast %112 : vector<1x32xf32> to vector<16x32xf32>
    %114 = arith.addf %110, %113 : vector<16x32xf32>
    %115 = arith.truncf %114 : vector<16x32xf32> to vector<16x32xbf16>
    %c0_45 = arith.constant 0 : index
    %c0_46 = arith.constant 0 : index
    %c0_47 = arith.constant 0 : index
    %116 = vector.load %arg11[%c0_45, %c0_46, %c0_47] : memref<1x32x64xbf16, #tpu.memory_space<vmem>>, vector<1x32x64xbf16>
    %117 = vector.shape_cast %116 : vector<1x32x64xbf16> to vector<32x64xbf16>
    %cst_48 = arith.constant dense<0.000000e+00> : vector<16x64xf32>
    %118 = tpu.matmul %115, %117, %cst_48 {dimension_numbers = #tpu.dot_dimension_numbers<[1], [0], [0], [1], [0, 0, 1, 1], [], []>} : vector<16x32xbf16>, vector<32x64xbf16>, vector<16x64xf32> -> vector<16x64xf32>
    %c0_49 = arith.constant 0 : index
    %c0_50 = arith.constant 0 : index
    %c0_51 = arith.constant 0 : index
    %119 = vector.load %arg12[%c0_49, %c0_50, %c0_51] : memref<1x1x64xf32, #tpu.memory_space<vmem>>, vector<1x1x64xf32>
    %120 = vector.shape_cast %119 : vector<1x1x64xf32> to vector<1x64xf32>
    %121 = vector.broadcast %120 : vector<1x64xf32> to vector<16x64xf32>
    %122 = arith.addf %118, %121 : vector<16x64xf32>
    %cst_52 = arith.constant 0.000000e+00 : f32
    %123 = vector.broadcast %cst_52 : f32 to vector<16x64xf32>
    %124 = arith.maximumf %122, %123 : vector<16x64xf32>
    %125 = arith.truncf %124 : vector<16x64xf32> to vector<16x64xbf16>
    %c0_53 = arith.constant 0 : index
    %c0_54 = arith.constant 0 : index
    %c0_55 = arith.constant 0 : index
    %126 = vector.load %arg13[%c0_53, %c0_54, %c0_55] : memref<1x64x32xbf16, #tpu.memory_space<vmem>>, vector<1x64x32xbf16>
    %127 = vector.shape_cast %126 : vector<1x64x32xbf16> to vector<64x32xbf16>
    %cst_56 = arith.constant dense<0.000000e+00> : vector<16x32xf32>
    %128 = tpu.matmul %125, %127, %cst_56 {dimension_numbers = #tpu.dot_dimension_numbers<[1], [0], [0], [1], [0, 0, 1, 1], [], []>} : vector<16x64xbf16>, vector<64x32xbf16>, vector<16x32xf32> -> vector<16x32xf32>
    %c0_57 = arith.constant 0 : index
    %c0_58 = arith.constant 0 : index
    %c0_59 = arith.constant 0 : index
    %129 = vector.load %arg14[%c0_57, %c0_58, %c0_59] : memref<1x1x32xf32, #tpu.memory_space<vmem>>, vector<1x1x32xf32>
    %130 = vector.shape_cast %129 : vector<1x1x32xf32> to vector<1x32xf32>
    %131 = vector.broadcast %130 : vector<1x32xf32> to vector<16x32xf32>
    %132 = arith.addf %128, %131 : vector<16x32xf32>
    %133 = arith.addf %114, %132 : vector<16x32xf32>
    %c0_60 = arith.constant 0 : index
    %c0_61 = arith.constant 0 : index
    %c0_62 = arith.constant 0 : index
    %134 = vector.load %arg15[%c0_60, %c0_61, %c0_62] : memref<1x1x32xf32, #tpu.memory_space<vmem>>, vector<1x1x32xf32>
    %135 = vector.shape_cast %134 : vector<1x1x32xf32> to vector<1x32xf32>
    %136 = vector.broadcast %135 : vector<1x32xf32> to vector<16x32xf32>
    %137 = arith.mulf %133, %136 : vector<16x32xf32>
    %c0_63 = arith.constant 0 : index
    %c0_64 = arith.constant 0 : index
    %c0_65 = arith.constant 0 : index
    %138 = vector.load %arg16[%c0_63, %c0_64, %c0_65] : memref<1x1x32xf32, #tpu.memory_space<vmem>>, vector<1x1x32xf32>
    %139 = vector.shape_cast %138 : vector<1x1x32xf32> to vector<1x32xf32>
    %140 = vector.broadcast %139 : vector<1x32xf32> to vector<16x32xf32>
    %141 = arith.addf %137, %140 : vector<16x32xf32>
    %c0_66 = arith.constant 0 : index
    %c0_67 = arith.constant 0 : index
    %142 = vector.load %arg17[%c0_66, %c0_67] : memref<16x32xf32, #tpu.memory_space<vmem>>, vector<16x32xf32>
    tpu.vector_store %arg17[%c0_66, %c0_67], %141 {strides = array<i32>} : memref<16x32xf32, #tpu.memory_space<vmem>>, vector<16x32xf32>,
    return
  }
  func.func @transform_0(%arg0: i32, %arg1: i32) -> (i32, i32) {
    %c0_i32 = arith.constant 0 : i32
    %c0_i32_0 = arith.constant 0 : i32
    return %arg0, %c0_i32 : i32, i32
  }
  func.func @transform_1(%arg0: i32, %arg1: i32) -> (i32, i32, i32) {
    %c0_i32 = arith.constant 0 : i32
    %c0_i32_0 = arith.constant 0 : i32
    %c0_i32_1 = arith.constant 0 : i32
    return %arg0, %c0_i32, %c0_i32_0 : i32, i32, i32
  }
  func.func @transform_2(%arg0: i32, %arg1: i32) -> (i32, i32) {
    %c0_i32 = arith.constant 0 : i32
    %c0_i32_0 = arith.constant 0 : i32
    %c0_i32_1 = arith.constant 0 : i32
    return %c0_i32, %c0_i32_0 : i32, i32
  }
  func.func @transform_3(%arg0: i32, %arg1: i32) -> (i32, i32) {
    %c0_i32 = arith.constant 0 : i32
    %c0_i32_0 = arith.constant 0 : i32
    %c0_i32_1 = arith.constant 0 : i32
    return %c0_i32, %c0_i32_0 : i32, i32
  }
  func.func @transform_4(%arg0: i32, %arg1: i32) -> (i32, i32, i32) {
    %c0_i32 = arith.constant 0 : i32
    %c0_i32_0 = arith.constant 0 : i32
    %c0_i32_1 = arith.constant 0 : i32
    return %arg1, %c0_i32, %c0_i32_0 : i32, i32, i32
  }
  func.func @transform_5(%arg0: i32, %arg1: i32) -> (i32, i32, i32) {
    %c0_i32 = arith.constant 0 : i32
    %c0_i32_0 = arith.constant 0 : i32
    %c0_i32_1 = arith.constant 0 : i32
    return %arg1, %c0_i32, %c0_i32_0 : i32, i32, i32
  }
  func.func @transform_6(%arg0: i32, %arg1: i32) -> (i32, i32, i32) {
    %c0_i32 = arith.constant 0 : i32
    %c0_i32_0 = arith.constant 0 : i32
    %c0_i32_1 = arith.constant 0 : i32
    return %arg1, %c0_i32, %c0_i32_0 : i32, i32, i32
  }
  func.func @transform_7(%arg0: i32, %arg1: i32) -> (i32, i32, i32) {
    %c0_i32 = arith.constant 0 : i32
    %c0_i32_0 = arith.constant 0 : i32
    %c0_i32_1 = arith.constant 0 : i32
    return %arg1, %c0_i32, %c0_i32_0 : i32, i32, i32
  }
  func.func @transform_8(%arg0: i32, %arg1: i32) -> (i32, i32, i32) {
    %c0_i32 = arith.constant 0 : i32
    %c0_i32_0 = arith.constant 0 : i32
    %c0_i32_1 = arith.constant 0 : i32
    return %arg1, %c0_i32, %c0_i32_0 : i32, i32, i32
  }
  func.func @transform_9(%arg0: i32, %arg1: i32) -> (i32, i32, i32) {
    %c0_i32 = arith.constant 0 : i32
    %c0_i32_0 = arith.constant 0 : i32
    %c0_i32_1 = arith.constant 0 : i32
    return %arg1, %c0_i32, %c0_i32_0 : i32, i32, i32
  }
  func.func @transform_10(%arg0: i32, %arg1: i32) -> (i32, i32, i32) {
    %c0_i32 = arith.constant 0 : i32
    %c0_i32_0 = arith.constant 0 : i32
    %c0_i32_1 = arith.constant 0 : i32
    return %arg1, %c0_i32, %c0_i32_0 : i32, i32, i32
  }
  func.func @transform_11(%arg0: i32, %arg1: i32) -> (i32, i32, i32) {
    %c0_i32 = arith.constant 0 : i32
    %c0_i32_0 = arith.constant 0 : i32
    %c0_i32_1 = arith.constant 0 : i32
    return %arg1, %c0_i32, %c0_i32_0 : i32, i32, i32
  }
  func.func @transform_12(%arg0: i32, %arg1: i32) -> (i32, i32, i32) {
    %c0_i32 = arith.constant 0 : i32
    %c0_i32_0 = arith.constant 0 : i32
    %c0_i32_1 = arith.constant 0 : i32
    return %arg1, %c0_i32, %c0_i32_0 : i32, i32, i32
  }
  func.func @transform_13(%arg0: i32, %arg1: i32) -> (i32, i32, i32) {
    %c0_i32 = arith.constant 0 : i32
    %c0_i32_0 = arith.constant 0 : i32
    %c0_i32_1 = arith.constant 0 : i32
    return %arg1, %c0_i32, %c0_i32_0 : i32, i32, i32
  }
  func.func @transform_14(%arg0: i32, %arg1: i32) -> (i32, i32, i32) {
    %c0_i32 = arith.constant 0 : i32
    %c0_i32_0 = arith.constant 0 : i32
    %c0_i32_1 = arith.constant 0 : i32
    return %arg1, %c0_i32, %c0_i32_0 : i32, i32, i32
  }
  func.func @transform_15(%arg0: i32, %arg1: i32) -> (i32, i32) {
    %c0_i32 = arith.constant 0 : i32
    %c0_i32_0 = arith.constant 0 : i32
    return %arg0, %c0_i32 : i32, i32
  }
}

</mosaic_0001>

<bundles_post_ra>
// kernel: tpu_custom_call.1
= control target key start
LH: loop header
LB: loop body
LE: loop exit
PB: predicated region body
PF: predicated region fallthrough
CT: control target
= control target key end

     0   :  { %s2518_s0 = inlined_call_operand.vmem [shape: f32[32,16], index: 0, kind: input, shape index: {}]   ;;  %s2519_s1 = inlined_call_operand.vmem [shape: f32[2,16,16], index: 1, kind: input, shape index: {}]   ;;  %s2520_s2 = inlined_call_operand.vmem [shape: bf16[16,32], index: 2, kind: input, shape index: {}]   ;;  %s2521_s3 = inlined_call_operand.vmem [shape: f32[1,32], index: 3, kind: input, shape index: {}]   ;;  %s2522_s4 = inlined_call_operand.vmem [shape: bf16[2,32,96], index: 4, kind: input, shape index: {}]   ;;  %s2523_s5 = inlined_call_operand.vmem [shape: bf16[2,32,32], index: 5, kind: input, shape index: {}]   ;;  %s2524_s6 = inlined_call_operand.vmem [shape: f32[2,1,32], index: 6, kind: input, shape index: {}]   ;;  %s2525_s7 = inlined_call_operand.vmem [shape: f32[2,1,32], index: 7, kind: input, shape index: {}]   ;;  %s2526_s8 = inlined_call_operand.vmem [shape: f32[2,1,32], index: 8, kind: input, shape index: {}]   ;;  %s2527_s9 = inlined_call_operand.hbm [shape: bf16[2,32,64], index: 9, kind: input, shape index: {}]   ;;  %s2528_s10 = inlined_call_operand.vmem [shape: f32[2,1,64], index: 10, kind: input, shape index: {}]   ;;  %s2529_s11 = inlined_call_operand.vmem [shape: bf16[2,64,32], index: 11, kind: input, shape index: {}]   ;;  %s2530_s12 = inlined_call_operand.vmem [shape: f32[2,1,32], index: 12, kind: input, shape index: {}]   ;;  %s2531_s13 = inlined_call_operand.vmem [shape: f32[2,1,32], index: 13, kind: input, shape index: {}]   ;;  %s2532_s14 = inlined_call_operand.vmem [shape: f32[2,1,32], index: 14, kind: input, shape index: {}]   ;;  %s2533_s15 = inlined_call_operand.hbm [shape: f32[32,32], index: 15, kind: output, shape index: {}]  }
   0x1   :  { %2551 = sst [smem:[#allocation23_spill]] %s2518_s0 }
   0x2   :  { %2552 = sst [smem:[#allocation24_spill]] %s2519_s1 }
   0x3   :  { %2553 = sst [smem:[#allocation25_spill]] %s2520_s2 }
   0x4   :  { %2554 = sst [smem:[#allocation26_spill]] %s2521_s3 }
   0x5   :  { %2555 = sst [smem:[#allocation27_spill]] %s2522_s4 }
   0x6   :  { %2556 = sst [smem:[#allocation28_spill]] %s2523_s5 }
   0x7   :  { %2557 = sst [smem:[#allocation29_spill]] %s2526_s8 }
   0x8   :  { %2558 = sst [smem:[#allocation30_spill]] %s2527_s9 }
   0x9   :  { %2559 = sst [smem:[#allocation31_spill]] %s2529_s11 }
   0xa   :  { %2560 = sst [smem:[#allocation32_spill]] %s2530_s12 }
   0xb   :  { %2561 = sst [smem:[#allocation33_spill]] %s2531_s13 }
   0xc   :  { %2562 = sst [smem:[#allocation34_spill]] %s2532_s14 }
   0xd   :  { %2563 = sst [smem:[#allocation35_spill]] %s2533_s15 }
   0xe   :  { %20 = vsyncpa [#allocation3], 0 }
   0xf   :  { %22 = vsyncpa [#allocation3 + $0x1], 0 }
  0x10   :  { %23 = vsyncpa [#allocation4], 0 }
  0x11   :  { %25 = vsyncpa [#allocation4 + $0x1], 0  ;;  %s2132_s18 = smov 0   ;;  %s2134_s19 = smov 0  }
  0x12   :  { %s2136_s20 = smov 0   ;;  %s2138_s21 = smov 0  }
  0x13   :  { %s2140_s22 = smov 0   ;;  %s2142_s23 = smov 0  }
  0x14   :  { %s2144_s24 = smov 0   ;;  %s2146_s25 = smov 0  }
  0x15   :  { %s2148_s26 = smov 0   ;;  %s2150_s27 = smov 0  }
  0x16   :  { %s2152_s28 = smov 0  }
  0x17 LB: > { %2564 = sst [smem:[#allocation8_spill]] %s1993_s18  ;;  %s1599_s29 = sadd.s32 4294967295, %s2033_s28   ;;  %s2033_s28 = sphi %s2152_s28, %s31_s28   ;;  %s2029_s27 = sphi %s2150_s27, %s2624_s27   ;;  %s2025_s26 = sphi %s2148_s26, %s2623_s26   ;;  %s2021_s25 = sphi %s2146_s25, %s2622_s25   ;;  %s2017_s24 = sphi %s2144_s24, %s2621_s24   ;;  %s2013_s23 = sphi %s2142_s23, %s2620_s23   ;;  %s2009_s22 = sphi %s2140_s22, %s2619_s22   ;;  %s2005_s21 = sphi %s2138_s21, %s2618_s21   ;;  %s2001_s20 = sphi %s2136_s20, %s2617_s20   ;;  %s1997_s19 = sphi %s2134_s19, %s2616_s19   ;;  %s1993_s18 = sphi %s2132_s18, %s2615_s18  }
  0x18   : > { %2565 = sst [smem:[#allocation9_spill]] %s1997_s19  ;;  %s1600_s30 = sadd.s32 4294967294, %s2033_s28  }
  0x19   : > { %2566 = sst [smem:[#allocation10_spill]] %s2001_s20  ;;  %s40_s16 = sadd.s32 1, %s2025_s26 }
  0x1a   : > { %2567 = sst [smem:[#allocation11_spill]] %s2009_s22  ;;  %s43_s17 = sadd.s32 1, %s2029_s27 }
  0x1b   : > { %2568 = sst [smem:[#allocation12_spill]] %s2013_s23  ;;  %p41_p0 = scmp.ge.s32.totalorder %s40_s16, 2 }
  0x1c   : > { %2569 = sst [smem:[#allocation13_spill]] %s2021_s25  ;;  %s274_s15 = sadd.s32 1, %s2013_s23 }
  0x1d   : > { %2570 = sst [smem:[#allocation14_spill]] %s2025_s26  ;;  %p281_p1 = scmp.ne.s32.totalorder %s2013_s23, %s2009_s22 }
  0x1e   : > { %2571 = sst [smem:[#allocation15_spill]] %s2029_s27  ;;  %p282_p2 = scmp.eq.s32.totalorder %s2033_s28, 0 }
  0x1f   : > { %2572 = sst [smem:[#allocation16_spill]] %s2033_s28  ;;  %s2626_s16 = smov (%p41_p0, %s40_s16), 0 }
  0x20   : > { %2573 = sst [smem:[#allocation17_spill]] %s2626_s16  ;;  %s2628_s17 = smov (!%p41_p0, %s43_s17), %s2029_s27 }
  0x21   : > { %s271_s3 = ssub.s32 %s2025_s26, %s2626_s16  ;;  %p2198_p3 = por %p282_p2, %p281_p1 }
  0x22   : > { %p45_p4 = scmp.ge.s32.totalorder %s2628_s17, 2  ;;  %p272_p5 = scmp.eq.s32.totalorder %s271_s3, 0 }
  0x23   : > { %p287_p6 = scmp.ne.s32.totalorder %s2009_s22, %s2005_s21  ;;  %p288_p7 = scmp.eq.s32.totalorder %s1599_s29, 0 }
  0x24   : > { %s2630_s17 = smov (%p45_p4, %s2628_s17), 0  ;;  %s430_s12 = sadd.s32 1, %s2001_s20 }
  0x25   : > { %2575 = sst [smem:[#allocation18_spill]] %s2630_s17  ;;  %p2208_p8 = por %p288_p7, %p287_p6 }
  0x26   : > { %s2206_s14 = scalar_select %p272_p5, %s2013_s23, %s274_s15  }
  0x27   : > { %s427_s13 = ssub.s32 %s2029_s27, %s2630_s17  ;;  %p440_p10 = scmp.ne.s32.totalorder %s2001_s20, %s1997_s19 }
  0x28   : > { %2576 = sst [smem:[#allocation19_spill]] %s2206_s14  ;;  %p428_p9 = scmp.eq.s32.totalorder %s427_s13, 0 }
  0x29   : > { %p441_p11 = scmp.eq.s32.totalorder %s1599_s29, 3  ;;  %p446_p13 = scmp.ne.s32.totalorder %s1997_s19, %s1993_s18 }
  0x2a   : > { %s2218_s3 = scalar_select %p428_p9, %s2001_s20, %s430_s12  }
  0x2b   : > { %p2220_p12 = por %p441_p11, %p440_p10  ;;  %p447_p0 = scmp.eq.s32.totalorder %s1600_s30, 3 }
  0x2c   : > { %2578 = sst [smem:[#allocation20_spill]] %s2218_s3  ;;  %p1719_p1 = scmp.lt.s32.totalorder %s2033_s28, 4 }
  0x2d   : > { %s2579_s21 = scalar_select %p2220_p12, 1, 0 }
  0x2e   : > { %s524_s15 = sand.u32 1, %s2013_s23   ;;  %p2228_p2 = por %p447_p0, %p446_p13 }
  0x2f   : > { %2580 = sst [smem:[#allocation21_spill]] %s2579_s21  ;;  %s1603_s13 = sshll.u32 %s524_s15, 4 }
  0x30   : > { %s2581_s14 = scalar_select %p2228_p2, 1, 0 }
  0x31   : > { %s1690_s17 = sshll.u32 %s2025_s26, 4  ;;  %s2583_s9 = sld [smem:[#allocation30_spill]] }
  0x32   : > { %2582 = sst [smem:[#allocation22_spill]] %s2581_s14  ;;  %s528_s20 = scalar_lea.vmem [#allocation2], %s1603_s13 }
  0x33   : > { %s536_s11 = sshll.u32 %s528_s20, 4  ;;  %p1712_p4 = pnand %p1719_p1, %p2198_p3  ;;  %s537_s11 = int_to_ptr.vmem [resolvable:$true] %s536_s11 }
  0x34   : > { %p1606_p5 = scmp.ge.s32.totalorder %s2033_s28, 1  ;;  %p576_p6 = scmp.lt.s32.totalorder %s2033_s28, 5 }
  0x35   : > { %s525_s30 = scalar_lea.sflag [#allocation3], %s524_s15  ;;  %s2035_s23 = smov 64  }
  0x36   : > { %s2036_s18 = smov 4   ;;  %p577_p7 = pnand %p1606_p5, %p576_p6 }
  0x37   : > { %s533_s12 = scalar_lea.hbm %s2583_s9, %s1690_s17  ;;  %s582_s26 = sand.u32 (!%p577_p7), 1, %s2009_s22  }
  0x38   : > { %s534_s3 = sshll.u32 %s533_s12, 4  ;;  %580 = sbr.rel (%p577_p7) target bundleno = 1363 (0x553), region = 80  ;;  %s535_s3 = int_to_ptr.hbm [resolvable:$true] %s534_s3 }
  0x39   : > { %1714 = dma.hbm_to_vmem [thread:$0]  (!%p1712_p4), %s535_s3, 256, %s537_s11, %s525_s30, %s2035_s23, %s2035_s23, %s2036_s18  }
  0x3a   : > { %s2241_s27 = sshll.u32 (!%p577_p7), %s582_s26, 4  ;;  %s583_s17 = scalar_lea.sflag (!%p577_p7), [#allocation3], %s582_s26 }
  0x3d   : > { %1984 = dma.done.wait (%p2208_p8), %s583_s17, 256  }
  0x3e   : > { %1986 = vsyncadd (%p2208_p8), %s583_s17, 4294967040  ;;  %s2542_s2 = sand.u32 1, %s1997_s19   ;;  %s1609_s11 = sshll.u32 %s2021_s25, 1 }
  0x3f   : > { %s1608_s18 = sshll.u32 %s2542_s2, 4  ;;  %p681_p3 = scmp.lt.s32.totalorder %s1609_s11, 3 }
  0x40   : > { %p686_p9 = scmp.lt.s32.totalorder %s2021_s25, 1  ;;  %p691_p10 = scmp.lt.s32.totalorder %s2017_s24, 1 }
  0x41   : > { %s2632_s11 = smov (!%p681_p3, %s1609_s11), 3  ;;  %s2584_s0 = sld [smem:[#allocation23_spill]] }
  0x42   : > { %s687_s23 = scalar_select %p686_p9, %s2021_s25, 1 }
  0x43   : > { %s1610_s26 = sshll.u32 %s2632_s11, 3  ;;  %s2585_s1 = sld [smem:[#allocation24_spill]] }
  0x44   : > { %s1691_s13 = sshll.u32 %s687_s23, 4  ;;  %s2586_s4 = sld [smem:[#allocation27_spill]] }
  0x45   : > { %s2264_s17 = scalar_select %p691_p10, %s2017_s24, 1 }
  0x46   : > { %s2587_s5 = sld [smem:[#allocation28_spill]]  ;;  %s2309_s21 = scalar_lea.vmem [#allocation5], %s1608_s18 }
  0x47   : > { %s684_s15 = scalar_lea.vmem %s2584_s0, %s1610_s26  ;;  %s1692_s11 = sshll.u32 %s2264_s17, 4 }
  0x48   : > { %s712_s26 = scalar_lea.vmem %s2528_s10, %s2264_s17  ;;  %s1694_s23 = sshll.u32 %s2264_s17, 5 }
  0x49   : > { %s2261_s30 = scalar_lea.vmem %s2585_s1, %s1691_s13  ;;  %s2590_s12 = sld [smem:[#allocation32_spill]] }
  0x4a   : > { %s695_s13 = scalar_lea.vmem %s2586_s4, %s1692_s11  ;;  %s2589_s4 = sld [smem:[#allocation31_spill]] }
  0x4b   : > { %s2591_s9 = sld [smem:[#allocation33_spill]]  ;;  %p1619_p8 = scmp.ne.s32.totalorder %s2017_s24, 0 }
  0x4c   : > { %s2277_s20 = scalar_lea.vmem %s2587_s5, %s1692_s11  ;;  %s2592_s28 = sld [smem:[#allocation34_spill]] }
  0x4e   : > { %732 = sbr.rel (%p1619_p8) target bundleno = 227 (0xe3), region = 88 }
  0x4f   : > { %s720_s5 = scalar_lea.vmem %s2590_s12, %s2264_s17 }
  0x50   : > { %s2295_s19 = scalar_lea.vmem %s2589_s4, %s1694_s23  ;;  %s2593_s23 = sld [smem:[#allocation25_spill]] (!%p1619_p8) }
  0x51   : > { %s723_s25 = scalar_lea.vmem %s2591_s9, %s2264_s17 }
  0x52   : > { %s726_s8 = scalar_lea.vmem %s2592_s28, %s2264_s17  ;;  %s2594_s28 = sld [smem:[#allocation26_spill]] (!%p1619_p8) }
  0x53   : > { %v733_v1 = vld [vmem:[%s684_s15] sm:$0xff]  ;;  %v734_v2 = vld [vmem:[%s684_s15 + $0x8] sm:$0xff]  ;;  %vm748_vm0 = vcmask 130048   ;;  %vm766_vm1 = vcmask 261120  }
  0x54   : > { %v735_v3 = vpack.c.bf16 %v734_v2, %v733_v1 }
  0x56   : > { %v1695_v0 = vld [vmem:[%s2593_s23] sm:$0xff] }
  0x57   : > { %759 = vmatpush.bf16.msra.mxu0 %v1695_v0 }
  0x58   : > { %v1826_v4 = vld [vmem:[%s2594_s28] ss:$0 sm:$0xff] }
  0x5a   : > { %1624 = vmatmul.msk.bf16.vlgmr.msra.gmra.mxu0 %vm748_vm0, %v735_v3 }
  0xd7   : > { %v761_v5 = vpop.f32.mrf.mxu0 }
  0xd8   : > { %v762_v6 = vadd.f32 %v1826_v4, %v761_v5 }
  0xda   : > { %767 = vst.msk [vmem:[%s2309_s21] sm:$0xff] %vm766_vm1, %v762_v6 }
  0xdf   : > { %v763_v7 = vpop.f32.mrf.mxu0 }
  0xe0   : > { %v764_v8 = vadd.f32 %v1826_v4, %v763_v7 }
  0xe2   : > { %768 = vst.msk [vmem:[%s2309_s21 + $0x8] sm:$0xff] %vm766_vm1, %v764_v8 }
  0xe3 PF: > { %v1697_v9 = vld [vmem:[%s695_s13 + $0x8] sm:$0xff]  ;;  %v1696_v10 = vld [vmem:[%s695_s13] sm:$0xff]  ;;  %vm790_vm2 = vcmask 261120   ;;  %s2037_s24 = smov 104   ;;  %s2038_s18 = smov 120   ;;  %vm812_vm3 = vcmask 64512  }
  0xe4   : > { %v2321_v11 = vld [vmem:[%s2309_s21] sm:$0xff]  ;;  %800 = vmatpush.bf16.msra.mxu0 %v1697_v9  ;;  %s2039_s15 = smov 96   ;;  %s2040_s13 = smov 80   ;;  %v773_v47 = vld [vmem:[%s2261_s30 + $0x8] sm:$0xff]  ;;  %vm843_vm4 = vcmask 130048  }
  0xe5   : > { %s2041_s29 = smov 72   ;;  %s2042_s2 = smov 88   ;;  %v772_v46 = vld [vmem:[%s2261_s30] sm:$0xff] }
  0xe6   : > { %s2043_s11 = smov 56   ;;  %s2044_s12 = smov 64  }
  0xe7   : > { %s2045_s0 = smov 112   ;;  %s2046_s1 = smov 48  }
  0xe8   : > { %801 = vmatpush.bf16.msra.mxu0 %v1696_v10  ;;  %s2047_s14 = smov 40   ;;  %s2048_s30 = smov 16  }
  0xe9   : > { %v2324_v12 = vld [vmem:[%s2309_s21 + $0x8] sm:$0xff]  ;;  %s2049_s22 = smov 8   ;;  %s2050_s3 = smov 24  }
  0xea   : > { %v771_v13 = vpack.c.bf16 %v2324_v12, %v2321_v11  ;;  %s2599_s16 = scalar_lea.vmem %s2524_s6, %s2264_s17  ;;  %s2607_s23 = sld [smem:[#allocation9_spill]] }
  0xec   : > { %1633 = vmatmul.msk.bf16.vlgmr.msra.gmra.mxu0 %vm790_vm2, %v771_v13 }
 0x169   : > { %v803_v14 = vpop.f32.mrf.mxu0 }
 0x171   : > { %v805_v15 = vpop.f32.mrf.mxu0 }
 0x172   : > { %v808_v16 = vpack.c.bf16 %v805_v15, %v803_v14 }
 0x174   : > { %1089 = vrot.lane.b32.xlu2 %v808_v16, %s2037_s24  ;;  %903 = vrot.lane.b32.xlu1 %v808_v16, %s2038_s18  ;;  %s2600_s18 = scalar_lea.vmem %s2525_s7, %s2264_s17  ;;  %s2609_s24 = sld [smem:[#allocation35_spill]] }
 0x175   : > { %810 = vrot.lane.b32.xlu0 %v808_v16, %s2039_s15 }
 0x17a   : > { %s2610_s15 = smov %s2609_s24 }
 0x17c   : > { %998 = vrot.lane.b32.xlu2 %v808_v16, %s2040_s13  ;;  %1091 = vrot.lane.b32.xlu1 %v808_v16, %s2041_s29  ;;  %s2601_s13 = sld [smem:[#allocation29_spill]] }
 0x17d   : > { %905 = vrot.lane.b32.xlu0 %v808_v16, %s2042_s2 }
 0x182   : > { %s2602_s29 = scalar_lea.vmem %s2601_s13, %s2264_s17 }
 0x184   : > { %944 = vrot.lane.b32.xlu2 %v808_v16, %s2043_s11  ;;  %851 = vrot.lane.b32.xlu1 %v808_v16, %s2044_s12  ;;  %s2603_s12 = sld [smem:[#allocation13_spill]] }
 0x185   : > { %996 = vrot.lane.b32.xlu0 %v808_v16, %s2045_s0 }
 0x18a   : > { %s1706_s9 = sshll.u32 %s2603_s12, 4  ;;  %s1931_s12 = scalar_lea.hbm %s2610_s15, 32 }
 0x18c   : > { %1037 = vrot.lane.b32.xlu1 %v808_v16, %s2046_s1 }
 0x18d   : > { %1130 = vrot.lane.b32.xlu0 %v808_v16, %s2047_s14 }
 0x1ce   : > { %v1090_v17 = vpop.permute.xlu2 %1089 }
 0x1d6   : > { %v999_v18 = vpop.permute.xlu2 %998 }
 0x1d7   : > { %v1004_v19 = vsel %vm812_vm3, %v999_v18, 0 }
 0x1d8   : > { %1013 = vmatpush.bf16.xpose.msrb.mxu0 %v1004_v19 }
 0x1de   : > { %v945_v29 = vpop.permute.xlu2 %944 }
 0x1e6   : > { %v904_v20 = vpop.permute.xlu1 %903 }
 0x1e7   : > { %v811_v21 = vpop.permute.xlu0 %810 }
 0x1e8   : > { %v817_v22 = vsel %vm812_vm3, %v811_v21, 0 }
 0x1e9   : > { %826 = vmatpush.bf16.xpose.msra.mxu1 %v817_v22 }
 0x1ee   : > { %v1092_v23 = vpop.permute.xlu1 %1091 }
 0x1ef   : > { %v906_v24 = vpop.permute.xlu0 %905  ;;  %v1097_v25 = vsel %vm812_vm3, %v1092_v23, 0 }
 0x1f0   : > { %1634 = vmatmul.msk.bf16.vlgmr.msra.gmra.mxu1 %vm812_vm3, %v808_v16  ;;  %v911_v26 = vsel %vm812_vm3, %v906_v24, 0 }
 0x1f1   : > { %920 = vmatpush.bf16.xpose.msra.mxu3 %v911_v26 }
 0x1f6   : > { %v852_v27 = vpop.permute.xlu1 %851 }
 0x1f7   : > { %v997_v28 = vpop.permute.xlu0 %996  ;;  %864 = vmatpush.bf16.msra.mxu2 %v852_v27 }
 0x1f8   : > { %1638 = vmatmul.msk.bf16.vlgmr.msra.gmra.mxu3 %vm812_vm3, %v904_v20  ;;  %1642 = vmatmul.msk.bf16.vlgmr.msrb.gmra.mxu0 %vm812_vm3, %v997_v28 }
 0x1f9   : > { %1106 = vmatpush.bf16.xpose.msrb.mxu3 %v1097_v25 }
 0x1fb   : > { %957 = vmatpush.bf16.msrb.mxu2 %v945_v29 }
 0x1fe   : > { %v1038_v30 = vpop.permute.xlu1 %1037 }
 0x1ff   : > { %1050 = vmatpush.bf16.msrb.mxu1 %v1038_v30  ;;  %v1131_v58 = vpop.permute.xlu0 %1130 }
 0x208   : > { %1646 = vmatmul.msk.bf16.vlgmr.msrb.gmra.mxu3 %vm812_vm3, %v1090_v17 }
 0x26d   : > { %v828_v31 = vpop.f32.mrf.mxu1 }
 0x26e   : > { %v1635_v32 = vclamps-f32 %v828_v31, 5.0 }
 0x270   : > { %v837_v33 = vmul.f32 1.442695, %v1635_v32 }
 0x272   : > { %1849 = vpow2.f32 %v837_v33 }
 0x275   : > { %v830_v34 = vpop.f32.mrf.mxu1  ;;  %v1015_v35 = vpop.f32.mrf.mxu0 }
 0x276   : > { %v1636_v36 = vclamps-f32 %v830_v34, 5.0  ;;  %v1643_v37 = vclamps-f32 %v1015_v35, 5.0 }
 0x278   : > { %v839_v38 = vmul.f32 1.442695, %v1636_v36  ;;  %v1024_v39 = vmul.f32 1.442695, %v1643_v37  ;;  %v1850_v43 = vpop.eup %1849 }
 0x279   : > { %v841_v51 = vmul.f32 %v1850_v43, %v772_v46 }
 0x27a   : > { %1851 = vpow2.f32 %v839_v38 }
 0x27b   : > { %1853 = vpow2.f32 %v1024_v39  ;;  %v922_v40 = vpop.f32.mrf.mxu3  ;;  %v844_v4 = vsel %vm843_vm4, %v841_v51, 0.0 }
 0x27c   : > { %v1639_v41 = vclamps-f32 %v922_v40, 5.0 }
 0x27d   : > { %v1017_v42 = vpop.f32.mrf.mxu0 }
 0x27e   : > { %v931_v44 = vmul.f32 1.442695, %v1639_v41  ;;  %v1644_v45 = vclamps-f32 %v1017_v42, 5.0 }
 0x280   : > { %v1852_v48 = vpop.eup %1851  ;;  %1855 = vpow2.f32 %v931_v44  ;;  %v1026_v49 = vmul.f32 1.442695, %v1644_v45 }
 0x281   : > { %v1854_v50 = vpop.eup %1853  ;;  %v842_v52 = vmul.f32 %v1852_v48, %v773_v47 }
 0x282   : > { %1857 = vpow2.f32 %v1026_v49  ;;  %v1028_v53 = vmul.f32 %v1854_v50, %v772_v46 }
 0x283   : > { %v924_v54 = vpop.f32.mrf.mxu3  ;;  %v850_v55 = vpack.c.bf16 %v842_v52, %v841_v51  ;;  %v847_v22 = vsel %vm843_vm4, %v842_v52, 0.0 }
 0x284   : > { %v1640_v56 = vclamps-f32 %v924_v54, 5.0  ;;  %v1030_v57 = vsel %vm843_vm4, %v1028_v53, 0.0 }
 0x285   : > { %1031 = vadd.xlane.f32.xlu1 %v1030_v57  ;;  %1637 = vmatmul.msk.bf16.vlgmr.msra.gmra.mxu2 %vm843_vm4, %v850_v55 }
 0x286   : > { %v1856_v59 = vpop.eup %1855  ;;  %v933_v60 = vmul.f32 1.442695, %v1640_v56  ;;  %1143 = vmatpush.bf16.msra.mxu2 %v1131_v58 }
 0x287   : > { %v935_v61 = vmul.f32 %v1856_v59, %v772_v46 }
 0x288   : > { %v1858_v62 = vpop.eup %1857  ;;  %1859 = vpow2.f32 %v933_v60 }
 0x289   : > { %v1029_v63 = vmul.f32 %v1858_v62, %v773_v47  ;;  %v937_v0 = vsel %vm843_vm4, %v935_v61, 0.0 }
 0x28a   : > { %938 = vadd.xlane.f32.xlu2 %v937_v0 }
 0x28b   : > { %v1036_v1 = vpack.c.bf16 %v1029_v63, %v1028_v53  ;;  %v1108_v2 = vpop.f32.mrf.mxu3  ;;  %v1033_v9 = vsel %vm843_vm4, %v1029_v63, 0.0  ;;  %v1699_v63 = vld [vmem:[%s2277_s20 + $0x8] sm:$0xff] }
 0x28c   : > { %v1647_v3 = vclamps-f32 %v1108_v2, 5.0  ;;  %1243 = vmatpush.bf16.msra.mxu0 %v1699_v63 }
 0x28d   : > { %845 = vadd.xlane.f32.xlu1 %v844_v4  ;;  %1645 = vmatmul.msk.bf16.vlgmr.msrb.gmra.mxu1 %vm843_vm4, %v1036_v1 }
 0x28e   : > { %v1860_v5 = vpop.eup %1859  ;;  %v1117_v6 = vmul.f32 1.442695, %v1647_v3 }
 0x28f   : > { %v936_v7 = vmul.f32 %v1860_v5, %v773_v47 }
 0x290   : > { %1861 = vpow2.f32 %v1117_v6 }
 0x291   : > { %v940_v8 = vsel %vm843_vm4, %v936_v7, 0.0  ;;  %v943_v10 = vpack.c.bf16 %v936_v7, %v935_v61 }
 0x292   : > { %941 = vadd.xlane.f32.xlu0 %v940_v8  ;;  %1034 = vadd.xlane.f32.xlu2 %v1033_v9 }
 0x293   : > { %v1110_v13 = vpop.f32.mrf.mxu3 }
 0x294   : > { %v1648_v14 = vclamps-f32 %v1110_v13, 5.0 }
 0x295   : > { %1641 = vmatmul.msk.bf16.vlgmr.msrb.gmra.mxu2 %vm843_vm4, %v943_v10 }
 0x296   : > { %v1862_v15 = vpop.eup %1861  ;;  %v1119_v16 = vmul.f32 1.442695, %v1648_v14 }
 0x297   : > { %v1121_v17 = vmul.f32 %v1862_v15, %v772_v46 }
 0x298   : > { %1863 = vpow2.f32 %v1119_v16 }
 0x299   : > { %v1123_v18 = vsel %vm843_vm4, %v1121_v17, 0.0 }
 0x29a   : > { %1124 = vadd.xlane.f32.xlu2 %v1123_v18 }
 0x29e   : > { %v1864_v19 = vpop.eup %1863 }
 0x29f   : > { %v1122_v20 = vmul.f32 %v1864_v19, %v773_v47 }
 0x2a1   : > { %v1126_v21 = vsel %vm843_vm4, %v1122_v20, 0.0  ;;  %v1129_v23 = vpack.c.bf16 %v1122_v20, %v1121_v17 }
 0x2a2   : > { %1127 = vadd.xlane.f32.xlu0 %v1126_v21  ;;  %848 = vadd.xlane.f32.xlu2 %v847_v22 }
 0x2a5   : > { %1649 = vmatmul.msk.bf16.vlgmr.msra.gmra.mxu2 %vm843_vm4, %v1129_v23 }
 0x2f8   : > { %v1032_v24 = vpop.xlane.xlu1 %1031 }
 0x2f9   : > { %v1057_v25 = vadd.f32 1e-06, %v1032_v24 }
 0x2fb   : > { %1865 = vrcp.f32 %v1057_v25  ;;  %vm1064_vm6 = vweird.f32 %v1057_v25  ;;  %v1070_v44 = vand.u32 2147483648, %v1057_v25  ;;  %v1068_v46 = vand.u32 2147483647, %v1057_v25 }
 0x2fd   : > { %v939_v26 = vpop.xlane.xlu2 %938  ;;  %v1071_v55 = vor.u32 1.1754944e-38, %v1070_v44  ;;  %vm1069_vm9 = vcmp.eq.f32.partialorder %v1068_v46, 8.507059e+37 }
 0x2fe   : > { %v2351_v27 = vadd.f32 1e-06, %v939_v26 }
 0x300   : > { %1867 = vrcp.f32 %v2351_v27  ;;  %vm971_vm15 = vweird.f32 %v2351_v27  ;;  %v977_v13 = vand.u32 2147483648, %v2351_v27  ;;  %v975_v17 = vand.u32 2147483647, %v2351_v27 }
 0x301   : > { %v1866_v28 = vpop.eup %1865 }
 0x302   : > { %v1060_v29 = vmul.f32 %v1866_v28, %v1057_v25  ;;  %vm1065_vm5 = vweird.f32 %v1866_v28  ;;  %v978_v22 = vor.u32 1.1754944e-38, %v977_v13 }
 0x303   : > { %vm1066_vm7 = vmor %vm1064_vm6, %vm1065_vm5  ;;  %vm976_vm6 = vcmp.eq.f32.partialorder %v975_v17, 8.507059e+37 }
 0x304   : > { %v1061_v34 = vsub.f32 1.0, %v1060_v29 }
 0x305   : > { %v1035_v30 = vpop.xlane.xlu2 %1034  ;;  %v942_v31 = vpop.xlane.xlu0 %941 }
 0x306   : > { %v1058_v32 = vadd.f32 1e-06, %v1035_v30  ;;  %v2354_v33 = vadd.f32 1e-06, %v942_v31  ;;  %v2358_v36 = vpop.eup %1867  ;;  %v1062_v37 = vmul.f32 %v1866_v28, %v1061_v34 }
 0x307   : > { %v967_v38 = vmul.f32 %v2358_v36, %v2351_v27  ;;  %vm972_vm13 = vweird.f32 %v2358_v36 }
 0x308   : > { %1869 = vrcp.f32 %v1058_v32  ;;  %v2356_v35 = vpop.f32.mrf.mxu2  ;;  %v1063_v42 = vadd.f32 %v1866_v28, %v1062_v37  ;;  %v1085_v53 = vand.u32 2147483648, %v1058_v32  ;;  %v1083_v57 = vand.u32 2147483647, %v1058_v32  ;;  %vm2385_vm0 = vmor %vm971_vm15, %vm972_vm13 }
 0x309   : > { %1871 = vrcp.f32 %v2354_v33  ;;  %v968_v49 = vsub.f32 1.0, %v967_v38  ;;  %vm1079_vm10 = vweird.f32 %v1058_v32  ;;  %v992_v14 = vand.u32 2147483648, %v2354_v33 }
 0x30a   : > { %v1052_v41 = vpop.f32.mrf.mxu1  ;;  %v1067_v52 = vsel %vm1066_vm7, %v1866_v28, %v1063_v42  ;;  %v1086_v0 = vor.u32 1.1754944e-38, %v1085_v53  ;;  %vm1084_vm12 = vcmp.eq.f32.partialorder %v1083_v57, 8.507059e+37  ;;  %vm986_vm1 = vweird.f32 %v2354_v33 }
 0x30b   : > { %v969_v58 = vmul.f32 %v2358_v36, %v968_v49  ;;  %v1072_v59 = vsel %vm1069_vm9, %v1071_v55, %v1067_v52  ;;  %v990_v18 = vand.u32 2147483647, %v2354_v33  ;;  %v993_v23 = vor.u32 1.1754944e-38, %v992_v14 }
 0x30c   : > { %v1073_v3 = vmul.f32 %v1072_v59, %v1052_v41 }
 0x30d   : > { %v1125_v39 = vpop.xlane.xlu2 %1124  ;;  %v970_v7 = vadd.f32 %v2358_v36, %v969_v58  ;;  %vm991_vm7 = vcmp.eq.f32.partialorder %v990_v18, 8.507059e+37 }
 0x30e   : > { %v1870_v40 = vpop.eup %1869  ;;  %v2365_v47 = vadd.f32 1e-06, %v1125_v39 }
 0x30f   : > { %v2363_v43 = vpop.eup %1871  ;;  %v1075_v45 = vmul.f32 %v1870_v40, %v1058_v32  ;;  %vm1080_vm8 = vweird.f32 %v1870_v40  ;;  %v974_v19 = vsel %vm2385_vm0, %v2358_v36, %v970_v7 }
 0x310   : > { %v2367_v48 = vpop.f32.mrf.mxu2  ;;  %v982_v50 = vmul.f32 %v2363_v43, %v2354_v33  ;;  %1873 = vrcp.f32 %v2365_v47  ;;  %vm1081_vm11 = vmor %vm1079_vm10, %vm1080_vm8  ;;  %vm987_vm14 = vweird.f32 %v2363_v43  ;;  %v979_v25 = vsel %vm976_vm6, %v978_v22, %v974_v19 }
 0x311   : > { %v1076_v51 = vsub.f32 1.0, %v1075_v45  ;;  %vm988_vm5 = vmor %vm986_vm1, %vm987_vm14  ;;  %vm1157_vm10 = vweird.f32 %v2365_v47  ;;  %v1161_v42 = vand.u32 2147483647, %v2365_v47 }
 0x312   : > { %v983_v54 = vsub.f32 1.0, %v982_v50  ;;  %v1054_v4 = vpop.f32.mrf.mxu1 }
 0x313   : > { %v1077_v56 = vmul.f32 %v1870_v40, %v1076_v51  ;;  %vm1162_vm14 = vcmp.eq.f32.partialorder %v1161_v42, 8.507059e+37  ;;  %v1843_v42 = vld [vmem:[%s2600_s18] ss:$0 sm:$0xff]  ;;  %s1389_s18 = sshll.u32 %s2309_s21, 4  ;;  %s1390_s18 = int_to_ptr.vmem [resolvable:$true] %s1389_s18 }
 0x314   : > { %v984_v62 = vmul.f32 %v2363_v43, %v983_v54 }
 0x315   : > { %v1078_v60 = vadd.f32 %v1870_v40, %v1077_v56  ;;  %v1128_v61 = vpop.xlane.xlu0 %1127  ;;  %v846_v56 = vpop.xlane.xlu1 %845 }
 0x316   : > { %v2375_v1 = vadd.f32 1e-06, %v1128_v61  ;;  %v985_v9 = vadd.f32 %v2363_v43, %v984_v62  ;;  %v1874_v10 = vpop.eup %1873  ;;  %v849_v57 = vpop.xlane.xlu2 %848  ;;  %v871_v58 = vadd.f32 1e-06, %v846_v56 }
 0x317   : > { %v1082_v2 = vsel %vm1081_vm11, %v1870_v40, %v1078_v60  ;;  %v1153_v21 = vmul.f32 %v1874_v10, %v2365_v47  ;;  %vm1158_vm8 = vweird.f32 %v1874_v10  ;;  %v1163_v40 = vand.u32 2147483648, %v2365_v47  ;;  %v1698_v47 = vld [vmem:[%s2277_s20] sm:$0xff]  ;;  %s2597_s20 = scalar_lea.vmem [#allocation2], %s2241_s27 }
 0x318   : > { %v1087_v5 = vsel %vm1084_vm12, %v1086_v0, %v1082_v2  ;;  %v959_v6 = vpop.f32.mrf.mxu2  ;;  %1875 = vrcp.f32 %v2375_v1  ;;  %v989_v20 = vsel %vm988_vm5, %v2363_v43, %v985_v9  ;;  %v1178_v41 = vand.u32 2147483648, %v2375_v1  ;;  %vm1159_vm11 = vmor %vm1157_vm10, %vm1158_vm8  ;;  %1244 = vmatpush.bf16.msra.mxu0 %v1698_v47  ;;  %s2598_s4 = smov %s2597_s20 }
 0x319   : > { %v1088_v8 = vmul.f32 %v1087_v5, %v1054_v4  ;;  %v994_v27 = vsel %vm991_vm7, %v993_v23, %v989_v20  ;;  %v980_v29 = vmul.f32 %v979_v25, %v959_v6  ;;  %v1154_v31 = vsub.f32 1.0, %v1153_v21 }
 0x31a   : > { %vm1172_vm12 = vweird.f32 %v2375_v1  ;;  %v1176_v43 = vand.u32 2147483647, %v2375_v1  ;;  %v1164_v46 = vor.u32 1.1754944e-38, %v1163_v40  ;;  %v1179_v49 = vor.u32 1.1754944e-38, %v1178_v41 }
 0x31b   : > { %v1832_v15 = vpack.i.bf16 %v1088_v8, %v1073_v3  ;;  %v1155_v34 = vmul.f32 %v1874_v10, %v1154_v31  ;;  %v872_v59 = vadd.f32 1e-06, %v849_v57  ;;  %1877 = vrcp.f32 %v871_v58 }
 0x31c   : > { %vm1177_vm15 = vcmp.eq.f32.partialorder %v1176_v43, 8.507059e+37  ;;  %vm878_vm5 = vweird.f32 %v871_v58  ;;  %v884_v6 = vand.u32 2147483648, %v871_v58  ;;  %v882_v8 = vand.u32 2147483647, %v871_v58 }
 0x31d   : > { %1833 = vrot.lane.b32.xlu1 %v1832_v15, %s2048_s30  ;;  %v1156_v38 = vadd.f32 %v1874_v10, %v1155_v34  ;;  %1879 = vrcp.f32 %v872_v59  ;;  %v899_v7 = vand.u32 2147483648, %v872_v59  ;;  %vm893_vm7 = vweird.f32 %v872_v59  ;;  %v1701_v34 = vld [vmem:[%s2597_s20 + $0x8] sm:$0xff] }
 0x31e   : > { %v1876_v24 = vpop.eup %1875  ;;  %v897_v9 = vand.u32 2147483647, %v872_v59  ;;  %v885_v14 = vor.u32 1.1754944e-38, %v884_v6  ;;  %1295 = vmatpush.bf16.msra.mxu1 %v1701_v34 }
 0x31f   : > { %v1168_v28 = vmul.f32 %v1876_v24, %v2375_v1  ;;  %vm1173_vm9 = vweird.f32 %v1876_v24  ;;  %v1160_v44 = vsel %vm1159_vm11, %v1874_v10, %v1156_v38  ;;  %v900_v15 = vor.u32 1.1754944e-38, %v899_v7  ;;  %v1842_v38 = vld [vmem:[%s2599_s16] ss:$0 sm:$0xff] }
 0x320   : > { %v961_v26 = vpop.f32.mrf.mxu2  ;;  %vm1174_vm13 = vmor %vm1172_vm12, %vm1173_vm9  ;;  %v1165_v50 = vsel %vm1162_vm14, %v1164_v46, %v1160_v44  ;;  %vm883_vm9 = vcmp.eq.f32.partialorder %v882_v8, 8.507059e+37  ;;  %vm898_vm10 = vcmp.eq.f32.partialorder %v897_v9, 8.507059e+37  ;;  %vm1210_vm11 = vcmask 195584   ;;  %v1844_v46 = vld [vmem:[%s2602_s29] ss:$0 sm:$0xff] }
 0x321   : > { %v995_v30 = vmul.f32 %v994_v27, %v961_v26  ;;  %v1169_v32 = vsub.f32 1.0, %v1168_v28  ;;  %v1878_v60 = vpop.eup %1877 }
 0x322   : > { %v874_v62 = vmul.f32 %v1878_v60, %v871_v58  ;;  %vm879_vm0 = vweird.f32 %v1878_v60 }
 0x323   : > { %v1827_v33 = vpack.i.bf16 %v995_v30, %v980_v29  ;;  %v1170_v36 = vmul.f32 %v1876_v24, %v1169_v32  ;;  %v1880_v61 = vpop.eup %1879  ;;  %vm880_vm6 = vmor %vm878_vm5, %vm879_vm0 }
 0x324   : > { %v889_v63 = vmul.f32 %v1880_v61, %v872_v59  ;;  %v875_v0 = vsub.f32 1.0, %v874_v62  ;;  %vm894_vm1 = vweird.f32 %v1880_v61  ;;  %v1846_v62 = vld [vmem:[%s720_s5] ss:$0 sm:$0xff] }
 0x325   : > { %1828 = vrot.lane.b32.xlu0 %v1827_v33, %s2049_s22  ;;  %v1171_v39 = vadd.f32 %v1876_v24, %v1170_v36  ;;  %vm895_vm8 = vmor %vm893_vm7, %vm894_vm1  ;;  %v1700_v36 = vld [vmem:[%s2598_s4] sm:$0xff] }
 0x326   : > { %v890_v1 = vsub.f32 1.0, %v889_v63  ;;  %v876_v2 = vmul.f32 %v1878_v60, %v875_v0  ;;  %1296 = vmatpush.bf16.msra.mxu1 %v1700_v36 }
 0x327   : > { %v1175_v45 = vsel %vm1174_vm13, %v1876_v24, %v1171_v39 }
 0x328   : > { %v1145_v37 = vpop.f32.mrf.mxu2  ;;  %v1180_v52 = vsel %vm1177_vm15, %v1179_v49, %v1175_v45  ;;  %v891_v3 = vmul.f32 %v1880_v61, %v890_v1  ;;  %v877_v4 = vadd.f32 %v1878_v60, %v876_v2  ;;  %v1847_v1 = vld [vmem:[%s723_s25] ss:$0 sm:$0xff]  ;;  %s1388_s25 = scalar_lea.hbm %s2609_s24, %s1706_s9 }
 0x329   : > { %v1166_v53 = vmul.f32 %v1165_v50, %v1145_v37  ;;  %v1705_v37 = vld [vmem:[%s2295_s19 + $0x18] sm:$0xff]  ;;  %s1391_s27 = sshll.u32 %s1388_s25, 4  ;;  %s1392_s27 = int_to_ptr.hbm [resolvable:$true] %s1391_s27 }
 0x32a   : > { %v892_v5 = vadd.f32 %v1880_v61, %v891_v3  ;;  %v881_v10 = vsel %vm880_vm6, %v1878_v60, %v877_v4  ;;  %1350 = vmatpush.bf16.msra.mxu3 %v1705_v37  ;;  %v1848_v3 = vld [vmem:[%s726_s8] ss:$0 sm:$0xff]  ;;  %s2611_s8 = sand.u32 1, %s2607_s23   ;;  %s1925_s13 = sshra.s32 %s1392_s27, 4  ;;  %s1926_s13 = int_to_ptr.hbm [resolvable:$true] %s1925_s13 }
 0x32b   : > { %v886_v16 = vsel %vm883_vm9, %v885_v14, %v881_v10  ;;  %s1377_s17 = scalar_lea.sflag [#allocation4], %s2611_s8  ;;  %s1927_s29 = scalar_lea.hbm %s1926_s13, 16 }
 0x32c   : > { %v896_v13 = vsel %vm895_vm8, %v1880_v61, %v892_v5  ;;  %v887_v21 = vmul.f32 %v886_v16, %v2356_v35  ;;  %p1928_p11 = scmp.ne.s32.totalorder %s1926_s13, %s1927_s29  ;;  %p1932_p1 = scmp.lt.s32.totalorder %s1926_s13, %s2610_s15 }
 0x32d   : > { %v901_v17 = vsel %vm898_vm10, %v900_v15, %v896_v13  ;;  %p1933_p4 = scmp.lt.s32.totalorder %s1931_s12, %s1927_s29 }
 0x32e   : > { %v902_v22 = vmul.f32 %v901_v17, %v2367_v48  ;;  %p1929_p13 = pnand %p1928_p11, %p2220_p12 }
 0x32f   : > { %p1934_p5 = por %p1933_p4, %p1932_p1 }
 0x330   : > { %v1147_v51 = vpop.f32.mrf.mxu2  ;;  %p1930_p0 = pneg %p1929_p13 }
 0x331   : > { %v1181_v54 = vmul.f32 %v1180_v52, %v1147_v51 }
 0x332   : > { %p1935_p6 = pnand %p1934_p5, %p1930_p0 }
 0x333   : > { %v1837_v55 = vpack.i.bf16 %v1181_v54, %v1166_v53  ;;  %v1704_v53 = vld [vmem:[%s2295_s19 + $0x10] sm:$0xff]  ;;  %v1703_v54 = vld [vmem:[%s2295_s19 + $0x8] sm:$0xff] }
 0x334   : > { %1351 = vmatpush.bf16.msra.mxu3 %v1704_v53 }
 0x335   : > { %1838 = vrot.lane.b32.xlu2 %v1837_v55, %s2050_s3  ;;  %v1702_v55 = vld [vmem:[%s2295_s19] sm:$0xff] }
 0x338   : > { %1352 = vmatpush.bf16.msra.mxu3 %v1703_v54 }
 0x33c   : > { %1353 = vmatpush.bf16.msra.mxu3 %v1702_v55 }
 0x38f   : > { %v1834_v18 = vpop.permute.xlu1 %1833  ;;  %v1839_v19 = vpop.permute.xlu2 %1838 }
 0x390   : > { %v1836_v25 = vunpack.i.h.bf16 %v1834_v18  ;;  %v1835_v26 = vunpack.i.l.bf16 %v1834_v18  ;;  %v1841_v27 = vunpack.i.h.bf16 %v1839_v19  ;;  %v1840_v28 = vunpack.i.l.bf16 %v1839_v19 }
 0x397   : > { %v1829_v20 = vpop.permute.xlu0 %1828 }
 0x398   : > { %v1831_v23 = vunpack.i.h.bf16 %v1829_v20  ;;  %v1830_v24 = vunpack.i.l.bf16 %v1829_v20 }
 0x39a   : > { %v1207_v29 = vsel %vm812_vm3, %v902_v22, %v1831_v23  ;;  %v1206_v30 = vsel %vm812_vm3, %v887_v21, %v1830_v24  ;;  %vm1342_vm3 = vcmask 523264  }
 0x39b   : > { %v1209_v31 = vsel %vm843_vm4, %v1207_v29, %v1836_v25  ;;  %v1208_v35 = vsel %vm843_vm4, %v1206_v30, %v1835_v26 }
 0x39c   : > { %v1212_v48 = vsel %vm1210_vm11, %v1209_v31, %v1841_v27  ;;  %v1211_v32 = vsel %vm1210_vm11, %v1208_v35, %v1840_v28 }
 0x39d   : > { %v1213_v33 = vpack.c.bf16 %v1212_v48, %v1211_v32 }
 0x39f   : > { %1658 = vmatmul.msk.bf16.vlgmr.msra.gmra.mxu0 %vm790_vm2, %v1213_v33 }
 0x41c   : > { %v1246_v39 = vpop.f32.mrf.mxu0 }
 0x41d   : > { %v1247_v40 = vadd.f32 %v1842_v38, %v1246_v39 }
 0x41f   : > { %v1251_v41 = vadd.f32 %v1247_v40, %v2321_v11 }
 0x421   : > { %v1257_v45 = vmul.f32 %v1843_v42, %v1251_v41 }
 0x423   : > { %v1263_v51 = vadd.f32 %v1844_v46, %v1257_v45 }
 0x424   : > { %v1248_v43 = vpop.f32.mrf.mxu0 }
 0x425   : > { %v1249_v44 = vadd.f32 %v1842_v38, %v1248_v43 }
 0x427   : > { %v1252_v49 = vadd.f32 %v1249_v44, %v2324_v12  ;;  %v1845_v12 = vld [vmem:[%s712_s26] ss:$0 sm:$0xff] }
 0x429   : > { %v1258_v50 = vmul.f32 %v1843_v42, %v1252_v49 }
 0x42b   : > { %v1264_v11 = vadd.f32 %v1844_v46, %v1258_v50 }
 0x42d   : > { %v1265_v52 = vpack.c.bf16 %v1264_v11, %v1263_v51 }
 0x42f   : > { %1667 = vmatmul.msk.bf16.vlgmr.msra.gmra.mxu1 %vm790_vm2, %v1265_v52 }
 0x4ac   : > { %v1298_v47 = vpop.f32.mrf.mxu1 }
 0x4ad   : > { %v1299_v56 = vadd.f32 %v1845_v12, %v1298_v47 }
 0x4af   : > { %v1303_v59 = vmax.f32 %v1299_v56, 0.0 }
 0x4b4   : > { %v1300_v57 = vpop.f32.mrf.mxu1 }
 0x4b5   : > { %v1301_v58 = vadd.f32 %v1845_v12, %v1300_v57 }
 0x4b7   : > { %v1304_v60 = vmax.f32 %v1301_v58, 0.0 }
 0x4b9   : > { %v1305_v61 = vpack.c.bf16 %v1304_v60, %v1303_v59 }
 0x4bb   : > { %1684 = vmatmul.msk.bf16.vlgmr.msra.gmra.mxu3 %vm1342_vm3, %v1305_v61 }
 0x53e   : > { %v1355_v63 = vpop.f32.mrf.mxu3 }
 0x53f   : > { %v1356_v0 = vadd.f32 %v1846_v62, %v1355_v63 }
 0x541   : > { %v1360_v2 = vadd.f32 %v1356_v0, %v1263_v51 }
 0x543   : > { %v1366_v4 = vmul.f32 %v1847_v1, %v1360_v2 }
 0x545   : > { %v1372_v5 = vadd.f32 %v1848_v3, %v1366_v4 }
 0x546   : > { %v1357_v6 = vpop.f32.mrf.mxu3 }
 0x547   : > { %1374 = vst.msk [vmem:[%s2309_s21] sm:$0xff] %vm790_vm2, %v1372_v5  ;;  %v1358_v7 = vadd.f32 %v1846_v62, %v1357_v6 }
 0x549   : > { %v1361_v8 = vadd.f32 %v1358_v7, %v1264_v11 }
 0x54b   : > { %v1367_v9 = vmul.f32 %v1847_v1, %v1361_v8 }
 0x54d   : > { %v1373_v10 = vadd.f32 %v1848_v3, %v1367_v9 }
 0x54f   : > { %1375 = vst.msk [vmem:[%s2309_s21 + $0x8] sm:$0xff] %vm790_vm2, %v1373_v10 }
 0x550   : > { %1938 = shalt.err (!%p1935_p6)
}
 0x551   : > { %s2051_s21 = smov 128  }
 0x552   : > { %1709 = dma.vmem_to_hbm [thread:$0]  (%p2220_p12), %s1390_s18, 256, %s1392_s27, %s1377_s17, %s2051_s21, %s2051_s21, %s2049_s22  }
 0x553 PF: > { %s2612_s1 = sld [smem:[#allocation16_spill]] }
 0x554   : > { %s2613_s14 = sld [smem:[#allocation8_spill]] }
 0x559   : > { %p1720_p7 = scmp.ge.s32.totalorder %s2612_s1, 2 }
 0x55a   : > { %s1406_s30 = sand.u32 1, %s2613_s14  }
 0x55b   : > { %p1716_p3 = pnand %p1720_p7, %p2228_p2  ;;  %s1407_s3 = scalar_lea.sflag [#allocation4], %s1406_s30 }
 0x55d   : > { %p1717_p9 = pneg %p1716_p3 }
 0x55f   : > { %1988 = dma.done.wait (%p1717_p9), %s1407_s3, 256  }
 0x560   : > { %1990 = vsyncadd (%p1717_p9), %s1407_s3, 4294967040  ;;  %s31_s28 = sadd.s32 1, %s2612_s1   ;;  %s2615_s18 = sld [smem:[#allocation9_spill]] }
 0x561   : > { %p28_p10 = scmp.ge.s32.totalorder %s31_s28, 6   ;;  %s2616_s19 = sld [smem:[#allocation10_spill]] }
 0x562   : > { %s2617_s20 = sld [smem:[#allocation20_spill]] }
 0x563   : > { %s2618_s21 = sld [smem:[#allocation11_spill]] }
 0x564   : > { %s2619_s22 = sld [smem:[#allocation12_spill]] }
 0x565   : > { %s2620_s23 = sld [smem:[#allocation19_spill]]  ;;  %30 = sbr.rel (!%p28_p10) target bundleno = 23 (0x17), region = 165 }
 0x566   : > { %s2621_s24 = sld [smem:[#allocation14_spill]] }
 0x567   : > { %s2622_s25 = sld [smem:[#allocation15_spill]] }
 0x568   : > { %s2623_s26 = sld [smem:[#allocation17_spill]] }
 0x569   : > { %s2624_s27 = sld [smem:[#allocation18_spill]] }
 0x56a   :  { %1413 = vsyncpa [#allocation3], 1 }
 0x56b   :  { %1415 = vsyncpa [#allocation3 + $0x1], 1 }
 0x56c   :  { %1416 = vsyncpa [#allocation4], 1 }
 0x56d   :  { %1418 = vsyncpa [#allocation4 + $0x1], 1 }

</bundles_post_ra>
